<compile_context>
chip_gen: v5e
topology: v5e:2x2
jax: 0.10.0
libtpu: 0.0.40
codegen_flags: <defaults>
</compile_context>

<pallas_src>
from functools import partial

import jax
import jax.numpy as jnp
from jax import lax
from jax.experimental import pallas as pl
from jax.experimental.pallas import tpu as pltpu


def _l2norm(x):
    # matches F.normalize(p=2, eps=1e-12): x / max(||x||, 1e-12)
    #   == x * rsqrt(max(||x||^2, 1e-24))   (EUP rsqrt + VPU multiply)
    ss = jnp.sum(x * x, axis=-1, keepdims=True)
    return x * lax.rsqrt(jnp.maximum(ss, 1e-24))


def _vpl_kernel(q_ref, win_ref, keys_ref, kproj_ref, prompts_ref, loss_ref,
                *, k, full_b, fused):
    f32 = jnp.float32
    q = q_ref[...].astype(f32)            # (TB, E)  query block (token dim squeezed)
    w_in = win_ref[...].astype(f32)       # (P, E)   nn.Linear(E->P).weight
    keys = keys_ref[...].astype(f32)      # (S, P)   precomputed l2norm(prompt_values)
    kproj = kproj_ref[...].astype(f32)    # (S, E) or block-diag (K*S, K*E)

    TB = q.shape[0]
    S = keys.shape[0]
    E = prompts_ref.shape[1] // k

    cdims = (((1,), (1,)), ((), ()))      # contract last dims of both operands (no .T)

    # in-projection + L2 normalize
    qp = lax.dot_general(q, w_in, cdims, preferred_element_type=f32)      # (TB, P)
    qn = _l2norm(qp)
    sim = lax.dot_general(qn, keys, cdims, preferred_element_type=f32)    # (TB, S)

    col = lax.broadcasted_iota(jnp.int32, (TB, S), 1)
    work = sim
    mask_acc = jnp.zeros((TB, S), f32)    # union of selected one-hots
    if fused:
        col_k = lax.broadcasted_iota(jnp.int32, (TB, k * S), 1)
        oh_cat = jnp.zeros((TB, k * S), f32)

    # top-k (descending, ties -> lowest index); k is small & static -> unrolled
    for j in range(k):
        m = jnp.max(work, axis=-1, keepdims=True)                 # (TB, 1) selected sim
        cand = jnp.where(work == m, col, S)
        am = jnp.min(cand, axis=-1, keepdims=True)                # argmax (TB, 1)
        oh = (col == am).astype(f32)                              # one-hot (TB, S)
        mask_acc = mask_acc + oh
        if fused:
            # accumulate shifted one-hot into the fused (TB, K*S) selection matrix
            oh_cat = oh_cat + (col_k == (am + j * S)).astype(f32)
        else:
            # direct static-offset store of the gathered, already-projected prompt
            # (dropout = identity in eval mode); unmasked when E % 128 == 0
            prompts_ref[:, j * E:(j + 1) * E] = jnp.dot(
                oh, kproj, preferred_element_type=f32)
        work = jnp.where(col == am, -jnp.inf, work)               # mask selected entry

    if fused:
        # one MXU pass: (TB, K*S) x block-diag(keys_proj) -> lane-dense (TB, K*E) slab
        prompts_ref[...] = jnp.dot(oh_cat, kproj, preferred_element_type=f32)

    # batch-dependent part of ps_loss: mse_loss(recon, query_normed, 'sum') / B
    # (work at a selected index equals sim there, so sum_j sel_sim_j*onehot_j == sim*mask)
    w_acc = sim * mask_acc
    recon = jnp.dot(w_acc, keys, preferred_element_type=f32)                # (TB, P)
    loss_ref[0, 0] = jnp.sum((recon - qn) ** 2) / full_b   # SMEM scalar path


def _pick_block_b(B, E, K, weight_bytes, vmem_cap):
    """Largest batch tile that fits a generation-aware VMEM budget."""
    per_row = 2 * 4 * (E + K * E)               # double-buffered query in + prompts out
    budget = int(vmem_cap * 0.6) - weight_bytes
    cap = max(8, budget // max(per_row, 1))
    cap = min(cap, 512)                          # 256-512 fills the 256-wide MXU, amortizes step cost
    if B <= cap:
        # split big single-block batches into 2 so the "parallel" axis shards across
        # both v7x TensorCores (no effect on v5e/v6e)
        if B >= 256 and B % 2 == 0 and (B // 2) % 8 == 0:
            return B // 2
        return B
    start = (min(cap, B) // 128) * 128           # largest mult-of-128 divisor of B
    for cand in range(start, 0, -128):
        if B % cand == 0:
            return cand
    for cand in range(min(cap, B), 0, -1):       # fallback: any sublane-aligned divisor
        if B % cand == 0 and cand % 8 == 0:
            return cand
    return B                                     # last resort: single block


def visual_prompt_learner_fwd(query, w_in, prompt_values, w_out, num_tokens, *, block_b=None):
    """query: (B, 1, E); w_in: (P, E); prompt_values: (S, 1, P); w_out: (E, P)."""
    B, _, E = query.shape
    P = w_in.shape[0]
    S = prompt_values.shape[0]
    K = num_tokens
    assert 0 < K < S, "basis path requires 0 < num_tokens < basis size"

    q2 = query[:, 0, :].astype(jnp.float32)            # glue: squeeze token dim
    pv2 = prompt_values[:, 0, :].astype(jnp.float32)   # mean over size-1 middle dim == squeeze

    # ---- grid-invariant precompute, hoisted out of the kernel (tiny XLA ops) ----
    keys = _l2norm(pv2)                                                     # (S, P)
    keys_proj = jnp.einsum('sp,ep->se', keys, w_out.astype(jnp.float32))    # (S, E)
    # key-orthogonality loss term is batch-independent: computed once here
    ksim = jnp.sum(jnp.abs(keys @ keys.T - jnp.eye(S, dtype=jnp.float32))) / B

    # small-E path: fuse the K per-selection gathers into one lane-dense MXU matmul
    fused = (E < 128) and (K * S <= 512)
    if fused:
        kproj_in = jnp.kron(jnp.eye(K, dtype=jnp.float32), keys_proj)       # (K*S, K*E)
    else:
        kproj_in = keys_proj                                                 # (S, E)

    weight_bytes = 2 * 4 * (P * E + S * P + kproj_in.shape[0] * kproj_in.shape[1])
    try:
        vmem_cap = int(pltpu.get_tpu_info().vmem_capacity_bytes)
    except Exception:
        vmem_cap = 64 << 20            # conservative default (v7x per-TensorCore)

    if block_b is None:
        block_b = _pick_block_b(B, E, K, weight_bytes, vmem_cap)
    assert B % block_b == 0
    nb = B // block_b

    est_vmem = 2 * 4 * block_b * E * (1 + K) + weight_bytes + (2 << 20)
    vmem_limit = int(min(vmem_cap * 0.9, max(32 << 20, 2 * est_vmem)))

    kernel = partial(_vpl_kernel, k=K, full_b=B, fused=fused)

    flops = 2 * (B * E * P + B * S * P + B * K * S * E + B * S * P)
    bytes_accessed = 4 * (B * E + P * E + S * P + kproj_in.size + B * K * E + nb)
    cost = pl.CostEstimate(flops=flops, transcendentals=0, bytes_accessed=bytes_accessed)

    prompts_flat, loss_parts = pl.pallas_call(
        kernel,
        out_shape=(
            jax.ShapeDtypeStruct((B, K * E), jnp.float32),
            jax.ShapeDtypeStruct((nb, 1), jnp.float32),
        ),
        grid=(nb,),
        in_specs=[
            pl.BlockSpec((block_b, E), lambda i: (i, 0)),          # query: blocked over B
            pl.BlockSpec((P, E), lambda i: (0, 0)),                # grid-invariant weights
            pl.BlockSpec((S, P), lambda i: (0, 0)),
            pl.BlockSpec(kproj_in.shape, lambda i: (0, 0)),
        ],
        out_specs=(
            pl.BlockSpec((block_b, K * E), lambda i: (i, 0)),      # lane-dense prompt slab
            pl.BlockSpec((1, 1), lambda i: (i, 0),
                         memory_space=pltpu.MemorySpace.SMEM),     # per-block partial loss
        ),
        compiler_params=pltpu.CompilerParams(
            dimension_semantics=("parallel",),
            vmem_limit_bytes=vmem_limit),
        cost_estimate=cost,
    )(q2, w_in.astype(jnp.float32), keys, kproj_in)

    prompts = prompts_flat.reshape(B, K, E)
    ps_loss = (jnp.sum(loss_parts) + ksim).reshape(1)   # ps_loss shape (1,) like the module
    return prompts, ps_loss


def _reference(query, w_in, prompt_values, w_out, k):
    """Pure-JAX reference of the PyTorch forward (eval mode)."""
    q = query[:, 0, :]
    qp = q @ w_in.T
    qn = qp / jnp.maximum(jnp.linalg.norm(qp, axis=-1, keepdims=True), 1e-12)
    pv2 = prompt_values[:, 0, :]
    keys = pv2 / jnp.maximum(jnp.linalg.norm(pv2, axis=-1, keepdims=True), 1e-12)
    sim = qn @ keys.T
    _, idx = jax.lax.top_k(sim, k)
    prompts = pv2[idx]
    prompts = prompts / jnp.maximum(
        jnp.linalg.norm(prompts, axis=-1, keepdims=True), 1e-12)
    sel_sim = jnp.take_along_axis(sim, idx, axis=-1)
    sel_key = keys[idx]
    recon = jnp.einsum('bk,bkp->bp', sel_sim, sel_key)
    B = q.shape[0]
    S = keys.shape[0]
    diff = jnp.sum((recon - qn) ** 2) / B
    ksim = jnp.sum(jnp.abs(keys @ keys.T - jnp.eye(S))) / B
    return prompts @ w_out.T, jnp.reshape(diff + ksim, (1,))


if __name__ == "__main__":
    # Small config consistent with the module:
    # embed_dim=32, prompt_dim=16, num_tokens=4, basis={'size': 8} -> use_basis=True
    B, E, P, S, K = 2, 32, 16, 8, 4

    key = jax.random.PRNGKey(0)
    k1, k2, k3, k4 = jax.random.split(key, 4)
    query = jax.random.normal(k1, (B, 1, E), jnp.float32)
    # nn.Linear(embed_dim, prompt_dim, bias=False).weight -> (P, E)
    w_in = jax.random.uniform(k2, (P, E), jnp.float32, -0.1, 0.1)
    # PromptBasisLearner.prompt_values ~ U(-1, 1), shape (S, 1, P)
    prompt_values = jax.random.uniform(k3, (S, 1, P), jnp.float32, -1.0, 1.0)
    # nn.Linear(prompt_dim, embed_dim, bias=False).weight, kaiming_normal fan_out
    w_out = jax.random.normal(k4, (E, P), jnp.float32) * (2.0 / E) ** 0.5

    prompts, ps_loss = visual_prompt_learner_fwd(query, w_in, prompt_values, w_out, K)
    jax.block_until_ready((prompts, ps_loss))

    ref_prompts, ref_loss = _reference(query, w_in, prompt_values, w_out, K)
    assert prompts.shape == (B, K, E) and ps_loss.shape == (1,)
    assert jnp.allclose(prompts, ref_prompts, atol=1e-4, rtol=1e-4)
    assert jnp.allclose(ps_loss, ref_loss, atol=1e-4, rtol=1e-4)
    print("KERNEL_OK")
</pallas_src>

<mosaic_0001>
module attributes {stable_mosaic.version = 11 : i64} {
  func.func @_vpl_kernel(%arg0: i32, %arg1: memref<2x32xf32, #tpu.memory_space<vmem>>, %arg2: memref<16x32xf32, #tpu.memory_space<vmem>>, %arg3: memref<8x16xf32, #tpu.memory_space<vmem>>, %arg4: memref<32x128xf32, #tpu.memory_space<vmem>>, %arg5: memref<2x128xf32, #tpu.memory_space<vmem>>, %arg6: memref<1x1xf32, #tpu.memory_space<smem>>) attributes {dimension_semantics = [#tpu.dimension_semantics<parallel>], iteration_bounds = array<i64: 1>, scalar_prefetch = 0 : i64, scratch_operands = 0 : i64, tpu.core_type = #tpu.core_type<tc>, window_params = [{transform_indices = @transform_0, window_bounds = array<i64: 2, 32>}, {pipeline_mode = #tpu.pipeline_mode<synchronous>, transform_indices = @transform_1, window_bounds = array<i64: 16, 32>}, {pipeline_mode = #tpu.pipeline_mode<synchronous>, transform_indices = @transform_2, window_bounds = array<i64: 8, 16>}, {pipeline_mode = #tpu.pipeline_mode<synchronous>, transform_indices = @transform_3, window_bounds = array<i64: 32, 128>}, {transform_indices = @transform_4, window_bounds = array<i64: 2, 128>}, {transform_indices = @transform_5, window_bounds = array<i64: 1, 1>}]} {
    %c0 = arith.constant 0 : index
    %c0_0 = arith.constant 0 : index
    %0 = vector.load %arg1[%c0, %c0_0] : memref<2x32xf32, #tpu.memory_space<vmem>>, vector<2x32xf32>
    %c0_1 = arith.constant 0 : index
    %c0_2 = arith.constant 0 : index
    %1 = vector.load %arg2[%c0_1, %c0_2] : memref<16x32xf32, #tpu.memory_space<vmem>>, vector<16x32xf32>
    %c0_3 = arith.constant 0 : index
    %c0_4 = arith.constant 0 : index
    %2 = vector.load %arg3[%c0_3, %c0_4] : memref<8x16xf32, #tpu.memory_space<vmem>>, vector<8x16xf32>
    %c0_5 = arith.constant 0 : index
    %c0_6 = arith.constant 0 : index
    %3 = vector.load %arg4[%c0_5, %c0_6] : memref<32x128xf32, #tpu.memory_space<vmem>>, vector<32x128xf32>
    %cst = arith.constant dense<0.000000e+00> : vector<2x16xf32>
    %4 = tpu.matmul %0, %1, %cst {dimension_numbers = #tpu.dot_dimension_numbers<[1], [1], [0], [0], [0, 0, 1, 0], [], []>} : vector<2x32xf32>, vector<16x32xf32>, vector<2x16xf32> -> vector<2x16xf32>
    %5 = arith.mulf %4, %4 : vector<2x16xf32>
    %cst_7 = arith.constant dense<0.000000e+00> : vector<2xf32>
    %6 = vector.multi_reduction <add>, %5, %cst_7 [1] : vector<2x16xf32> to vector<2xf32>
    %7 = vector.shape_cast %6 : vector<2xf32> to vector<2x1xf32>
    %cst_8 = arith.constant 1.000000e-24 : f32
    %8 = vector.broadcast %cst_8 : f32 to vector<2x1xf32>
    %9 = arith.maximumf %7, %8 : vector<2x1xf32>
    %10 = math.rsqrt %9 : vector<2x1xf32>
    %11 = vector.broadcast %10 : vector<2x1xf32> to vector<2x16xf32>
    %12 = arith.mulf %4, %11 : vector<2x16xf32>
    %cst_9 = arith.constant dense<0.000000e+00> : vector<2x8xf32>
    %13 = tpu.matmul %12, %2, %cst_9 {dimension_numbers = #tpu.dot_dimension_numbers<[1], [1], [0], [0], [0, 0, 1, 0], [], []>} : vector<2x16xf32>, vector<8x16xf32>, vector<2x8xf32> -> vector<2x8xf32>
    %14 = tpu.iota {dimensions = array<i32: 1>} : vector<2x8xi32>
    %cst_10 = arith.constant 0.000000e+00 : f32
    %15 = vector.broadcast %cst_10 : f32 to vector<2x8xf32>
    %16 = tpu.iota {dimensions = array<i32: 1>} : vector<2x32xi32>
    %cst_11 = arith.constant 0.000000e+00 : f32
    %17 = vector.broadcast %cst_11 : f32 to vector<2x32xf32>
    %cst_12 = arith.constant dense<0xFF800000> : vector<2xf32>
    %18 = vector.multi_reduction <maximumf>, %13, %cst_12 [1] : vector<2x8xf32> to vector<2xf32>
    %19 = vector.shape_cast %18 : vector<2xf32> to vector<2x1xf32>
    %20 = vector.broadcast %19 : vector<2x1xf32> to vector<2x8xf32>
    %21 = arith.cmpf oeq, %13, %20 : vector<2x8xf32>
    %c8_i32 = arith.constant 8 : i32
    %22 = vector.broadcast %c8_i32 : i32 to vector<2x8xi32>
    %23 = arith.select %21, %14, %22 : vector<2x8xi1>, vector<2x8xi32>
    %cst_13 = arith.constant dense<2147483647> : vector<2xi32>
    %24 = vector.multi_reduction <minsi>, %23, %cst_13 [1] : vector<2x8xi32> to vector<2xi32>
    %25 = vector.shape_cast %24 : vector<2xi32> to vector<2x1xi32>
    %26 = vector.broadcast %25 : vector<2x1xi32> to vector<2x8xi32>
    %27 = arith.cmpi eq, %14, %26 : vector<2x8xi32>
    %28 = arith.extui %27 : vector<2x8xi1> to vector<2x8xi32>
    %29 = arith.sitofp %28 : vector<2x8xi32> to vector<2x8xf32>
    %30 = arith.addf %15, %29 : vector<2x8xf32>
    %c0_i32 = arith.constant 0 : i32
    %31 = vector.broadcast %c0_i32 : i32 to vector<2x1xi32>
    %32 = arith.addi %25, %31 : vector<2x1xi32>
    %33 = vector.broadcast %32 : vector<2x1xi32> to vector<2x32xi32>
    %34 = arith.cmpi eq, %16, %33 : vector<2x32xi32>
    %35 = arith.extui %34 : vector<2x32xi1> to vector<2x32xi32>
    %36 = arith.sitofp %35 : vector<2x32xi32> to vector<2x32xf32>
    %37 = arith.addf %17, %36 : vector<2x32xf32>
    %38 = vector.broadcast %25 : vector<2x1xi32> to vector<2x8xi32>
    %39 = arith.cmpi eq, %14, %38 : vector<2x8xi32>
    %cst_14 = arith.constant 0xFF800000 : f32
    %40 = vector.broadcast %cst_14 : f32 to vector<2x8xf32>
    %41 = arith.select %39, %40, %13 : vector<2x8xi1>, vector<2x8xf32>
    %cst_15 = arith.constant dense<0xFF800000> : vector<2xf32>
    %42 = vector.multi_reduction <maximumf>, %41, %cst_15 [1] : vector<2x8xf32> to vector<2xf32>
    %43 = vector.shape_cast %42 : vector<2xf32> to vector<2x1xf32>
    %44 = vector.broadcast %43 : vector<2x1xf32> to vector<2x8xf32>
    %45 = arith.cmpf oeq, %41, %44 : vector<2x8xf32>
    %c8_i32_16 = arith.constant 8 : i32
    %46 = vector.broadcast %c8_i32_16 : i32 to vector<2x8xi32>
    %47 = arith.select %45, %14, %46 : vector<2x8xi1>, vector<2x8xi32>
    %cst_17 = arith.constant dense<2147483647> : vector<2xi32>
    %48 = vector.multi_reduction <minsi>, %47, %cst_17 [1] : vector<2x8xi32> to vector<2xi32>
    %49 = vector.shape_cast %48 : vector<2xi32> to vector<2x1xi32>
    %50 = vector.broadcast %49 : vector<2x1xi32> to vector<2x8xi32>
    %51 = arith.cmpi eq, %14, %50 : vector<2x8xi32>
    %52 = arith.extui %51 : vector<2x8xi1> to vector<2x8xi32>
    %53 = arith.sitofp %52 : vector<2x8xi32> to vector<2x8xf32>
    %54 = arith.addf %30, %53 : vector<2x8xf32>
    %c8_i32_18 = arith.constant 8 : i32
    %55 = vector.broadcast %c8_i32_18 : i32 to vector<2x1xi32>
    %56 = arith.addi %49, %55 : vector<2x1xi32>
    %57 = vector.broadcast %56 : vector<2x1xi32> to vector<2x32xi32>
    %58 = arith.cmpi eq, %16, %57 : vector<2x32xi32>
    %59 = arith.extui %58 : vector<2x32xi1> to vector<2x32xi32>
    %60 = arith.sitofp %59 : vector<2x32xi32> to vector<2x32xf32>
    %61 = arith.addf %37, %60 : vector<2x32xf32>
    %62 = vector.broadcast %49 : vector<2x1xi32> to vector<2x8xi32>
    %63 = arith.cmpi eq, %14, %62 : vector<2x8xi32>
    %cst_19 = arith.constant 0xFF800000 : f32
    %64 = vector.broadcast %cst_19 : f32 to vector<2x8xf32>
    %65 = arith.select %63, %64, %41 : vector<2x8xi1>, vector<2x8xf32>
    %cst_20 = arith.constant dense<0xFF800000> : vector<2xf32>
    %66 = vector.multi_reduction <maximumf>, %65, %cst_20 [1] : vector<2x8xf32> to vector<2xf32>
    %67 = vector.shape_cast %66 : vector<2xf32> to vector<2x1xf32>
    %68 = vector.broadcast %67 : vector<2x1xf32> to vector<2x8xf32>
    %69 = arith.cmpf oeq, %65, %68 : vector<2x8xf32>
    %c8_i32_21 = arith.constant 8 : i32
    %70 = vector.broadcast %c8_i32_21 : i32 to vector<2x8xi32>
    %71 = arith.select %69, %14, %70 : vector<2x8xi1>, vector<2x8xi32>
    %cst_22 = arith.constant dense<2147483647> : vector<2xi32>
    %72 = vector.multi_reduction <minsi>, %71, %cst_22 [1] : vector<2x8xi32> to vector<2xi32>
    %73 = vector.shape_cast %72 : vector<2xi32> to vector<2x1xi32>
    %74 = vector.broadcast %73 : vector<2x1xi32> to vector<2x8xi32>
    %75 = arith.cmpi eq, %14, %74 : vector<2x8xi32>
    %76 = arith.extui %75 : vector<2x8xi1> to vector<2x8xi32>
    %77 = arith.sitofp %76 : vector<2x8xi32> to vector<2x8xf32>
    %78 = arith.addf %54, %77 : vector<2x8xf32>
    %c16_i32 = arith.constant 16 : i32
    %79 = vector.broadcast %c16_i32 : i32 to vector<2x1xi32>
    %80 = arith.addi %73, %79 : vector<2x1xi32>
    %81 = vector.broadcast %80 : vector<2x1xi32> to vector<2x32xi32>
    %82 = arith.cmpi eq, %16, %81 : vector<2x32xi32>
    %83 = arith.extui %82 : vector<2x32xi1> to vector<2x32xi32>
    %84 = arith.sitofp %83 : vector<2x32xi32> to vector<2x32xf32>
    %85 = arith.addf %61, %84 : vector<2x32xf32>
    %86 = vector.broadcast %73 : vector<2x1xi32> to vector<2x8xi32>
    %87 = arith.cmpi eq, %14, %86 : vector<2x8xi32>
    %cst_23 = arith.constant 0xFF800000 : f32
    %88 = vector.broadcast %cst_23 : f32 to vector<2x8xf32>
    %89 = arith.select %87, %88, %65 : vector<2x8xi1>, vector<2x8xf32>
    %cst_24 = arith.constant dense<0xFF800000> : vector<2xf32>
    %90 = vector.multi_reduction <maximumf>, %89, %cst_24 [1] : vector<2x8xf32> to vector<2xf32>
    %91 = vector.shape_cast %90 : vector<2xf32> to vector<2x1xf32>
    %92 = vector.broadcast %91 : vector<2x1xf32> to vector<2x8xf32>
    %93 = arith.cmpf oeq, %89, %92 : vector<2x8xf32>
    %c8_i32_25 = arith.constant 8 : i32
    %94 = vector.broadcast %c8_i32_25 : i32 to vector<2x8xi32>
    %95 = arith.select %93, %14, %94 : vector<2x8xi1>, vector<2x8xi32>
    %cst_26 = arith.constant dense<2147483647> : vector<2xi32>
    %96 = vector.multi_reduction <minsi>, %95, %cst_26 [1] : vector<2x8xi32> to vector<2xi32>
    %97 = vector.shape_cast %96 : vector<2xi32> to vector<2x1xi32>
    %98 = vector.broadcast %97 : vector<2x1xi32> to vector<2x8xi32>
    %99 = arith.cmpi eq, %14, %98 : vector<2x8xi32>
    %100 = arith.extui %99 : vector<2x8xi1> to vector<2x8xi32>
    %101 = arith.sitofp %100 : vector<2x8xi32> to vector<2x8xf32>
    %102 = arith.addf %78, %101 : vector<2x8xf32>
    %c24_i32 = arith.constant 24 : i32
    %103 = vector.broadcast %c24_i32 : i32 to vector<2x1xi32>
    %104 = arith.addi %97, %103 : vector<2x1xi32>
    %105 = vector.broadcast %104 : vector<2x1xi32> to vector<2x32xi32>
    %106 = arith.cmpi eq, %16, %105 : vector<2x32xi32>
    %107 = arith.extui %106 : vector<2x32xi1> to vector<2x32xi32>
    %108 = arith.sitofp %107 : vector<2x32xi32> to vector<2x32xf32>
    %109 = arith.addf %85, %108 : vector<2x32xf32>
    %cst_27 = arith.constant dense<0.000000e+00> : vector<2x128xf32>
    %110 = tpu.matmul %109, %3, %cst_27 {dimension_numbers = #tpu.dot_dimension_numbers<[1], [0], [0], [1], [0, 0, 1, 1], [], []>} : vector<2x32xf32>, vector<32x128xf32>, vector<2x128xf32> -> vector<2x128xf32>
    %c0_28 = arith.constant 0 : index
    %c0_29 = arith.constant 0 : index
    %111 = vector.load %arg5[%c0_28, %c0_29] : memref<2x128xf32, #tpu.memory_space<vmem>>, vector<2x128xf32>
    tpu.vector_store %arg5[%c0_28, %c0_29], %110 {strides = array<i32>} : memref<2x128xf32, #tpu.memory_space<vmem>>, vector<2x128xf32>,
    %112 = arith.mulf %13, %102 : vector<2x8xf32>
    %cst_30 = arith.constant dense<0.000000e+00> : vector<2x16xf32>
    %113 = tpu.matmul %112, %2, %cst_30 {dimension_numbers = #tpu.dot_dimension_numbers<[1], [0], [0], [1], [0, 0, 1, 1], [], []>} : vector<2x8xf32>, vector<8x16xf32>, vector<2x16xf32> -> vector<2x16xf32>
    %114 = arith.subf %113, %12 : vector<2x16xf32>
    %115 = arith.mulf %114, %114 : vector<2x16xf32>
    %116 = vector.shape_cast %115 : vector<2x16xf32> to vector<1x2x16xf32>
    %cst_31 = arith.constant dense<0.000000e+00> : vector<1xf32>
    %117 = vector.multi_reduction <add>, %116, %cst_31 [1, 2] : vector<1x2x16xf32> to vector<1xf32>
    %118 = vector.shape_cast %117 : vector<1xf32> to vector<1x1x1xf32>
    %119 = vector.extract %118[0, 0, 0] : f32 from vector<1x1x1xf32>
    %cst_32 = arith.constant 2.000000e+00 : f32
    %120 = arith.divf %119, %cst_32 : f32
    %c0_33 = arith.constant 0 : index
    %c0_34 = arith.constant 0 : index
    %121 = memref.load %arg6[%c0_33, %c0_34] : memref<1x1xf32, #tpu.memory_space<smem>>
    memref.store %120, %arg6[%c0_33, %c0_34] : memref<1x1xf32, #tpu.memory_space<smem>>
    return
  }
  func.func @transform_0(%arg0: i32) -> (i32, i32) {
    %c0_i32 = arith.constant 0 : i32
    %c0_i32_0 = arith.constant 0 : i32
    return %arg0, %c0_i32 : i32, i32
  }
  func.func @transform_1(%arg0: i32) -> (i32, i32) {
    %c0_i32 = arith.constant 0 : i32
    %c0_i32_0 = arith.constant 0 : i32
    %c0_i32_1 = arith.constant 0 : i32
    return %c0_i32, %c0_i32_0 : i32, i32
  }
  func.func @transform_2(%arg0: i32) -> (i32, i32) {
    %c0_i32 = arith.constant 0 : i32
    %c0_i32_0 = arith.constant 0 : i32
    %c0_i32_1 = arith.constant 0 : i32
    return %c0_i32, %c0_i32_0 : i32, i32
  }
  func.func @transform_3(%arg0: i32) -> (i32, i32) {
    %c0_i32 = arith.constant 0 : i32
    %c0_i32_0 = arith.constant 0 : i32
    %c0_i32_1 = arith.constant 0 : i32
    return %c0_i32, %c0_i32_0 : i32, i32
  }
  func.func @transform_4(%arg0: i32) -> (i32, i32) {
    %c0_i32 = arith.constant 0 : i32
    %c0_i32_0 = arith.constant 0 : i32
    return %arg0, %c0_i32 : i32, i32
  }
  func.func @transform_5(%arg0: i32) -> (i32, i32) {
    %c0_i32 = arith.constant 0 : i32
    %c0_i32_0 = arith.constant 0 : i32
    return %arg0, %c0_i32 : i32, i32
  }
}

</mosaic_0001>

<bundles_post_ra>
// kernel: tpu_custom_call.1
= control target key start
LH: loop header
LB: loop body
LE: loop exit
PB: predicated region body
PF: predicated region fallthrough
CT: control target
= control target key end

     0   :  { %11 = vsyncpa [#allocation3], 0  ;;  %s667_s0 = inlined_call_operand.hbm [shape: f32[2,32], index: 0, kind: input, shape index: {}]   ;;  %s668_s1 = inlined_call_operand.hbm [shape: f32[16,32], index: 1, kind: input, shape index: {}]   ;;  %s669_s2 = inlined_call_operand.hbm [shape: f32[8,16], index: 2, kind: input, shape index: {}]   ;;  %s670_s3 = inlined_call_operand.hbm [shape: f32[32,128], index: 3, kind: input, shape index: {}]   ;;  %s671_s4 = inlined_call_operand.hbm [shape: f32[2,128], index: 4, kind: output, shape index: {0}]   ;;  %s672_s5 = inlined_call_operand.hbm [shape: f32[1,1], index: 5, kind: output, shape index: {1}]  }
   0x1   :  { %12 = vsyncpa [#allocation7], 0 }
   0x2   :  { %13 = vsyncpa [#allocation10], 0 }
   0x3   :  { %14 = vsyncpa [#allocation4], 0  ;;  %s31_s20 = sshll.u32 %s668_s1, 4  ;;  %s32_s20 = int_to_ptr.hbm [resolvable:$true] %s31_s20 }
   0x4   :  { %15 = vsyncpa [#allocation5], 0  ;;  %s559_s21 = smov [#allocation6]   ;;  %s21_s25 = sshll.u32 %s667_s0, 4  ;;  %s22_s25 = int_to_ptr.hbm [resolvable:$true] %s21_s25 }
   0x5   :  { %s33_s22 = sshll.u32 %s559_s21, 4  ;;  %s560_s26 = smov 128   ;;  %s34_s22 = int_to_ptr.vmem [resolvable:$true] %s33_s22 }
   0x6   :  { %s561_s27 = smov 8   ;;  %s562_s28 = smov [#allocation2]  }
   0x7   :  { %39 = dma.hbm_to_vmem [thread:$0]  %s32_s20, 256, %s34_s22, [#allocation7], %s560_s26, %s560_s26, %s561_s27  }
   0x8   :  { %s23_s29 = sshll.u32 %s562_s28, 4  ;;  %s45_s7 = sshll.u32 %s669_s2, 4  ;;  %s24_s29 = int_to_ptr.vmem [resolvable:$true] %s23_s29  ;;  %s46_s7 = int_to_ptr.hbm [resolvable:$true] %s45_s7 }
   0x9   :  { %26 = dma.hbm_to_vmem [thread:$0]  %s22_s25, 32, %s24_s29, [#allocation3]  }
   0xa   :  { %s55_s9 = sshll.u32 %s670_s3, 4  ;;  %s563_s10 = smov [#allocation8]   ;;  %s56_s9 = int_to_ptr.hbm [resolvable:$true] %s55_s9 }
   0xb   :  { %s47_s11 = sshll.u32 %s563_s10, 4  ;;  %s564_s0 = smov [#allocation9]   ;;  %s48_s11 = int_to_ptr.vmem [resolvable:$true] %s47_s11 }
   0xc   :  { %50 = dma.hbm_to_vmem [thread:$0]  %s46_s7, 128, %s48_s11, [#allocation7]  }
   0xd   :  { %s57_s12 = sshll.u32 %s564_s0, 4  ;;  %s58_s12 = int_to_ptr.vmem [resolvable:$true] %s57_s12 }
   0xe   :  { %63 = dma.hbm_to_vmem [thread:$0]  %s56_s9, 512, %s58_s12, [#allocation10], %s560_s26, %s560_s26, %s561_s27  }
   0xf   :  { %549 = dma.done.wait [#allocation3], 32  }
  0x10   :  { %550 = vsyncadd [#allocation3], 4294967264 }
  0x11   :  { %551 = dma.done.wait [#allocation7], 384  }
  0x12   :  { %552 = vsyncadd [#allocation7], 4294966912 }
  0x13   :  { %553 = dma.done.wait [#allocation10], 512  }
  0x14   :  { %554 = vsyncadd [#allocation10], 4294966784  ;;  %vm88_vm0 = vcmask 261120   ;;  %v82_v0 = vld [vmem:[#allocation6 + $0x8] sm:$0xff]  ;;  %v81_v1 = vld [vmem:[#allocation6] sm:$0xff]  ;;  %vm119_vm1 = vcmask 123904   ;;  %v162_v19 = vlaneseq }
  0x15   :  { %385 = vmatpush.xpose.msk.msra.mxu0 %vm88_vm0, %v82_v0  ;;  %v80_v2 = vld [vmem:[#allocation2] sm:$0x3]  ;;  %v83_v6 = vld [vmem:[#allocation8] sm:$0xff]  ;;  %vm135_vm2 = vcmask 130048   ;;  %vm164_vm6 = vcmask 58368   ;;  %v565_v52 = vmov 0.0  }
  0x16   :  { %388 = vmatpush.xpose.msk.msra.mxu1 %vm135_vm2, %v83_v6  ;;  %323 = vmatpush.msra.mxu3 %v83_v6  ;;  %v624_v20 = vand.u32 127, %v162_v19  ;;  %s566_s2 = smov [#allocation11]   ;;  %s358_s15 = sshll.u32 %s671_s4, 4  ;;  %s359_s15 = int_to_ptr.hbm [resolvable:$true] %s358_s15 }
  0x17   :  { %s356_s3 = sshll.u32 %s566_s2, 4  ;;  %s367_s17 = sshll.u32 %s672_s5, 4  ;;  %s357_s3 = int_to_ptr.vmem [resolvable:$true] %s356_s3  ;;  %s368_s17 = int_to_ptr.hbm [resolvable:$true] %s367_s17 }
  0x18   :  { %s568_s21 = smov [#allocation12]  }
  0x19   :  { %386 = vmatpush.xpose.msk.msra.mxu0 %vm88_vm0, %v81_v1 }
  0x1c   :  { %387 = vmatmul.msk.f32.vlgmr.msra.gmra.mxu0 %vm88_vm0, %v80_v2 }
  0x99   :  { %v115_v3 = vpop.f32.mrf.mxu0 }
  0x9a   :  { %v118_v4 = vmul.f32 %v115_v3, %v115_v3 }
  0x9c   :  { %v120_v5 = vsel %vm119_vm1, %v118_v4, 0.0 }
  0x9d   :  { %121 = vadd.xlane.f32.xlu0 %v120_v5 }
 0x110   :  { %v122_v7 = vpop.xlane.xlu0 %121 }
 0x111   :  { %v123_v8 = vmax.f32 %v122_v7, 1e-24 }
 0x113   :  { %413 = vrsqrt.f32 %v123_v8  ;;  %vm130_vm4 = vweird.f32 %v123_v8 }
 0x119   :  { %v414_v9 = vpop.eup %413 }
 0x11a   :  { %v125_v10 = vmul.f32 %v414_v9, %v123_v8  ;;  %vm131_vm3 = vweird.f32 %v414_v9 }
 0x11b   :  { %vm132_vm5 = vmor %vm130_vm4, %vm131_vm3 }
 0x11c   :  { %v126_v11 = vmul.f32 %v414_v9, %v125_v10 }
 0x11e   :  { %v127_v12 = vmul.f32 0.5, %v126_v11 }
 0x120   :  { %v128_v13 = vsub.f32 1.5, %v127_v12 }
 0x122   :  { %v129_v14 = vmul.f32 %v414_v9, %v128_v13 }
 0x124   :  { %v133_v15 = vsel %vm132_vm5, %v414_v9, %v129_v14 }
 0x125   :  { %v616_v16 = vmul.f32 %v133_v15, %v115_v3 }
 0x127   :  { %389 = vmatmul.msk.f32.vlgmr.msra.gmra.mxu1 %vm135_vm2, %v616_v16 }
 0x1a4   :  { %v620_v17 = vpop.f32.mrf.mxu1 }
 0x1a5   :  { %v165_v18 = vsel %vm164_vm6, %v620_v17, -inf }
 0x1a6   :  { %166 = vmax.xlane.f32.xlu0 %v165_v18 }
 0x219   :  { %v167_v21 = vpop.xlane.xlu0 %166 }
 0x21a   :  { %vm168_vm7 = vcmp.eq.f32.partialorder %v620_v17, %v167_v21 }
 0x21b   :  { %v169_v22 = vsel %vm168_vm7, %v624_v20, 8 }
 0x21c   :  { %v170_v23 = vsel %vm164_vm6, %v169_v22, 2147483647 }
 0x21d   :  { %v172_v24 = vshra.s32 %v170_v23, 16  ;;  %v171_v26 = vand.u32 65535, %v170_v23 }
 0x21f   :  { %v174_v25 = vcvt.s32.f32 %v172_v24  ;;  %v173_v28 = vcvt.s32.f32 %v171_v26 }
 0x221   :  { %175 = vmin.xlane.f32.xlu1 %v174_v25 }
 0x294   :  { %v176_v27 = vpop.xlane.xlu1 %175 }
 0x295   :  { %vm177_vm8 = vcmp.eq.f32.partialorder %v174_v25, %v176_v27  ;;  %v182_v30 = vcvt.f32.s32 %v176_v27 }
 0x296   :  { %v178_v29 = vsel %vm177_vm8, %v173_v28, inf  ;;  %vm304_vm8 = vcmask 64512  }
 0x297   :  { %179 = vmin.xlane.f32.xlu1 %v178_v29  ;;  %v183_v32 = vshll.u32 %v182_v30, 16  ;;  %v87_v29 = vld [vmem:[#allocation9 + $0x18] sm:$0xff]  ;;  %v86_v30 = vld [vmem:[#allocation9 + $0x10] sm:$0xff] }
 0x298   :  { %294 = vmatpush.msra.mxu2 %v87_v29 }
 0x29a   :  { %295 = vmatpush.msra.mxu2 %v86_v30 }
 0x30a   :  { %v180_v31 = vpop.xlane.xlu1 %179 }
 0x30b   :  { %v181_v33 = vcvt.f32.s32 %v180_v31  ;;  %v85_v31 = vld [vmem:[#allocation9 + $0x8] sm:$0xff] }
 0x30c   :  { %296 = vmatpush.msra.mxu2 %v85_v31 }
 0x30d   :  { %v184_v34 = vadd.s32 %v183_v32, %v181_v33  ;;  %v84_v32 = vld [vmem:[#allocation9] sm:$0xff] }
 0x30e   :  { %297 = vmatpush.msra.mxu2 %v84_v32 }
 0x30f   :  { %vm185_vm9 = vcmp.eq.s32.totalorder %v624_v20, %v184_v34 }
 0x310   :  { %v189_v35 = vsel %vm185_vm9, -inf, %v620_v17  ;;  %v390_v53 = vsel %vm185_vm9, 1.0, %v565_v52 }
 0x311   :  { %v190_v36 = vsel %vm164_vm6, %v189_v35, -inf }
 0x312   :  { %191 = vmax.xlane.f32.xlu2 %v190_v36 }
 0x385   :  { %v192_v37 = vpop.xlane.xlu2 %191 }
 0x386   :  { %vm193_vm10 = vcmp.eq.f32.partialorder %v189_v35, %v192_v37 }
 0x387   :  { %v194_v38 = vsel %vm193_vm10, %v624_v20, 8 }
 0x388   :  { %v195_v39 = vsel %vm164_vm6, %v194_v38, 2147483647 }
 0x389   :  { %v197_v40 = vshra.s32 %v195_v39, 16  ;;  %v196_v42 = vand.u32 65535, %v195_v39 }
 0x38b   :  { %v199_v41 = vcvt.s32.f32 %v197_v40  ;;  %v198_v44 = vcvt.s32.f32 %v196_v42 }
 0x38d   :  { %200 = vmin.xlane.f32.xlu2 %v199_v41 }
 0x400   :  { %v201_v43 = vpop.xlane.xlu2 %200 }
 0x401   :  { %vm202_vm11 = vcmp.eq.f32.partialorder %v199_v41, %v201_v43  ;;  %v207_v46 = vcvt.f32.s32 %v201_v43 }
 0x402   :  { %v203_v45 = vsel %vm202_vm11, %v198_v44, inf }
 0x403   :  { %204 = vmin.xlane.f32.xlu0 %v203_v45  ;;  %v208_v48 = vshll.u32 %v207_v46, 16 }
 0x476   :  { %v205_v47 = vpop.xlane.xlu0 %204 }
 0x477   :  { %v206_v49 = vcvt.f32.s32 %v205_v47 }
 0x479   :  { %v209_v50 = vadd.s32 %v208_v48, %v206_v49 }
 0x47b   :  { %v214_v51 = vadd.s32 8, %v209_v50  ;;  %vm210_vm12 = vcmp.eq.s32.totalorder %v624_v20, %v209_v50 }
 0x47c   :  { %v219_v54 = vsel %vm210_vm12, -inf, %v189_v35  ;;  %v391_v55 = vsel %vm210_vm12, 1.0, %v565_v52 }
 0x47d   :  { %vm215_vm13 = vcmp.eq.s32.totalorder %v624_v20, %v214_v51  ;;  %v220_v56 = vsel %vm164_vm6, %v219_v54, -inf  ;;  %v213_v57 = vadd.f32 %v391_v55, %v390_v53 }
 0x47e   :  { %v392_v58 = vsel %vm215_vm13, 1.0, %v565_v52  ;;  %221 = vmax.xlane.f32.xlu1 %v220_v56 }
 0x47f   :  { %v218_v59 = vadd.f32 %v392_v58, %v390_v53 }
 0x4f1   :  { %v222_v60 = vpop.xlane.xlu1 %221 }
 0x4f2   :  { %vm223_vm14 = vcmp.eq.f32.partialorder %v219_v54, %v222_v60 }
 0x4f3   :  { %v224_v61 = vsel %vm223_vm14, %v624_v20, 8 }
 0x4f4   :  { %v225_v62 = vsel %vm164_vm6, %v224_v61, 2147483647 }
 0x4f5   :  { %v227_v63 = vshra.s32 %v225_v62, 16  ;;  %v226_v1 = vand.u32 65535, %v225_v62 }
 0x4f7   :  { %v229_v0 = vcvt.s32.f32 %v227_v63  ;;  %v228_v3 = vcvt.s32.f32 %v226_v1 }
 0x4f9   :  { %230 = vmin.xlane.f32.xlu2 %v229_v0 }
 0x56c   :  { %v231_v2 = vpop.xlane.xlu2 %230 }
 0x56d   :  { %vm232_vm15 = vcmp.eq.f32.partialorder %v229_v0, %v231_v2  ;;  %v237_v5 = vcvt.f32.s32 %v231_v2 }
 0x56e   :  { %v233_v4 = vsel %vm232_vm15, %v228_v3, inf }
 0x56f   :  { %234 = vmin.xlane.f32.xlu0 %v233_v4  ;;  %v238_v7 = vshll.u32 %v237_v5, 16 }
 0x5e2   :  { %v235_v6 = vpop.xlane.xlu0 %234 }
 0x5e3   :  { %v236_v8 = vcvt.f32.s32 %v235_v6 }
 0x5e5   :  { %v239_v9 = vadd.s32 %v238_v7, %v236_v8 }
 0x5e7   :  { %v244_v10 = vadd.s32 16, %v239_v9  ;;  %vm240_vm2 = vcmp.eq.s32.totalorder %v624_v20, %v239_v9 }
 0x5e8   :  { %v249_v11 = vsel %vm240_vm2, -inf, %v219_v54  ;;  %v393_v12 = vsel %vm240_vm2, 1.0, %v565_v52 }
 0x5e9   :  { %vm245_vm3 = vcmp.eq.s32.totalorder %v624_v20, %v244_v10  ;;  %v250_v13 = vsel %vm164_vm6, %v249_v11, -inf  ;;  %v243_v14 = vadd.f32 %v393_v12, %v213_v57 }
 0x5ea   :  { %251 = vmax.xlane.f32.xlu1 %v250_v13  ;;  %v394_v15 = vsel %vm245_vm3, 1.0, %v565_v52 }
 0x5eb   :  { %v248_v18 = vadd.f32 %v394_v15, %v218_v59 }
 0x65d   :  { %v252_v19 = vpop.xlane.xlu1 %251 }
 0x65e   :  { %vm253_vm4 = vcmp.eq.f32.partialorder %v249_v11, %v252_v19 }
 0x65f   :  { %v254_v21 = vsel %vm253_vm4, %v624_v20, 8 }
 0x660   :  { %v255_v22 = vsel %vm164_vm6, %v254_v21, 2147483647 }
 0x661   :  { %v257_v23 = vshra.s32 %v255_v22, 16  ;;  %v256_v25 = vand.u32 65535, %v255_v22 }
 0x663   :  { %v259_v24 = vcvt.s32.f32 %v257_v23  ;;  %v258_v27 = vcvt.s32.f32 %v256_v25 }
 0x665   :  { %260 = vmin.xlane.f32.xlu2 %v259_v24 }
 0x6d8   :  { %v261_v26 = vpop.xlane.xlu2 %260 }
 0x6d9   :  { %vm262_vm5 = vcmp.eq.f32.partialorder %v259_v24, %v261_v26  ;;  %v267_v33 = vcvt.f32.s32 %v261_v26 }
 0x6da   :  { %v263_v28 = vsel %vm262_vm5, %v258_v27, inf }
 0x6db   :  { %264 = vmin.xlane.f32.xlu0 %v263_v28  ;;  %v268_v35 = vshll.u32 %v267_v33, 16 }
 0x74e   :  { %v265_v34 = vpop.xlane.xlu0 %264 }
 0x74f   :  { %v266_v36 = vcvt.f32.s32 %v265_v34 }
 0x751   :  { %v269_v37 = vadd.s32 %v268_v35, %v266_v36 }
 0x753   :  { %vm270_vm6 = vcmp.eq.s32.totalorder %v624_v20, %v269_v37  ;;  %v274_v38 = vadd.s32 24, %v269_v37 }
 0x754   :  { %v395_v39 = vsel %vm270_vm6, 1.0, %v565_v52 }
 0x755   :  { %v273_v40 = vadd.f32 %v395_v39, %v243_v14  ;;  %vm275_vm7 = vcmp.eq.s32.totalorder %v624_v20, %v274_v38 }
 0x756   :  { %v396_v41 = vsel %vm275_vm7, 1.0, %v565_v52 }
 0x757   :  { %v278_v42 = vadd.f32 %v396_v41, %v248_v18  ;;  %v303_v43 = vmul.f32 %v273_v40, %v620_v17  ;;  %v567_v17 = vmov 2.0  }
 0x758   :  { %415 = vrcp.f32 %v567_v17 }
 0x759   :  { %397 = vmatmul.msk.f32.vlgmr.msra.gmra.mxu2 %vm88_vm0, %v278_v42  ;;  %398 = vmatmul.msk.f32.vlgmr.msra.gmra.mxu3 %vm304_vm8, %v303_v43 }
 0x75e   :  { %v416_v20 = vpop.eup %415 }
 0x75f   :  { %v341_v49 = vmul.f32 2.0, %v416_v20  ;;  %vm345_vm0 = vweird.f32 %v416_v20 }
 0x761   :  { %v342_v50 = vsub.f32 1.0, %v341_v49 }
 0x763   :  { %v343_v53 = vmul.f32 %v416_v20, %v342_v50 }
 0x765   :  { %v344_v56 = vadd.f32 %v416_v20, %v343_v53 }
 0x767   :  { %v346_v59 = vsel %vm345_vm0, %v416_v20, %v344_v56 }
 0x7dc   :  { %v299_v44 = vpop.f32.mrf.mxu2  ;;  %v325_v45 = vpop.f32.mrf.mxu3 }
 0x7dd   :  { %302 = vst [vmem:[#allocation11] sm:$0x3] %v299_v44  ;;  %v328_v46 = vsub.f32 %v325_v45, %v616_v16 }
 0x7de   :  { %361 = dma.vmem_to_hbm [thread:$0]  %s357_s3, 32, %s359_s15, [#allocation4]  }
 0x7df   :  { %v329_v47 = vmul.f32 %v328_v46, %v328_v46 }
 0x7e1   :  { %v330_v48 = vsel %vm119_vm1, %v329_v47, 0.0 }
 0x7e2   :  { %331 = vadd.xlane.f32.xlu1 %v330_v48 }
 0x855   :  { %v332_v51 = vpop.xlane.xlu1 %331 }
 0x856   :  { %v333_v16 = vrot.slane %v332_v51, 4 }
 0x858   :  { %v334_v52 = vadd.f32 %v333_v16, %v332_v51 }
 0x85a   :  { %v335_v54 = vrot.slane %v334_v52, 2 }
 0x85c   :  { %v336_v55 = vadd.f32 %v335_v54, %v334_v52 }
 0x85e   :  { %v337_v57 = vrot.slane %v336_v55, 1 }
 0x860   :  { %v338_v58 = vadd.f32 %v337_v57, %v336_v55 }
 0x862   :  { %399 = vpush %v338_v58 }
 0x863   :  { %401 = vpush %v346_v59 }
 0x893   :  { %s400_s18 = spop %399 }
 0x894   :  { %s402_s19 = spop %401 }
 0x895   :  { %s348_s20 = smul.f32 %s402_s19, %s400_s18 }
 0x897   :  { %350 = sst [smem:[#allocation12]] %s348_s20 }
 0x898   :  { %370 = dma.smem_to_hbm %s568_s21, 16, %s368_s17, [#allocation5]  }
 0x899   :  { %555 = dma.done.wait [#allocation4], 32  }
 0x89a   :  { %556 = vsyncadd [#allocation4], 4294967264 }
 0x89b   :  { %557 = dma.done.wait [#allocation5], 16  }
 0x89c   :  { %558 = vsyncadd [#allocation5], 4294967280 }
 0x89d   :  { %379 = sfence }
 0x89e   :  { %380 = vsyncpa [#allocation3], 1 }
 0x89f   :  { %381 = vsyncpa [#allocation7], 1 }
 0x8a0   :  { %382 = vsyncpa [#allocation10], 1 }
 0x8a1   :  { %383 = vsyncpa [#allocation4], 1 }
 0x8a2   :  { %384 = vsyncpa [#allocation5], 1 }

</bundles_post_ra>
